<compile_context>
chip_gen: v5e
topology: v5e:2x2
jax: 0.10.0
libtpu: 0.0.40
codegen_flags: <defaults>
</compile_context>

<pallas_src>
import numpy as np
import jax
import jax.numpy as jnp
from jax import lax
from jax.experimental import pallas as pl
from jax.experimental.pallas import tpu as pltpu


# ------------------------------ fused kernel ------------------------------- #

def _make_inception_kernel(H, W, cin, c1, c2r, c2, c3r, c3, cp):
    M = H * W
    pow2_w = (W & (W - 1)) == 0
    taps = [(dy - 1, dx - 1) for dy in range(3) for dx in range(3)]

    def kernel(x_ref,                       # (1, cin, M)   image, f32, lane-dense
               w1_ref, s1_ref, b1_ref,      # fused 1x1 (b1 + b2_red + b3_red)
               wc_ref, sc_ref, bc_ref,      # merged 3x3 (per-tap block-diag weights)
               wp_ref, sp_ref, bp_ref,      # pool-branch 1x1
               o_ref):                      # (1, ctot, M)  output, f32, lane-dense
        x = x_ref[0]                                             # (cin, M)

        # ---- border validity masks from a lane iota over the flat H*W axis --
        m_idx = lax.broadcasted_iota(jnp.int32, (1, M), 1)
        col = (m_idx & (W - 1)) if pow2_w else (m_idx % W)
        row_ok = {-1: m_idx >= W, 0: None, 1: m_idx < (H - 1) * W}
        col_ok = {-1: col > 0,    0: None, 1: col < W - 1}

        def shifted(a, oy, ox):             # a[:, m + oy*W + ox]; wrap is masked later
            delta = oy * W + ox
            return a if delta == 0 else pltpu.roll(a, (-delta) % M, axis=1)

        def tap_mask(oy, ox):
            r, c = row_ok[oy], col_ok[ox]
            if r is None:
                return c
            if c is None:
                return r
            return r & c

        # ---- ONE MXU pass for the three 1x1 convs that read X ---------------
        xb = x.astype(jnp.bfloat16)
        y = jnp.dot(w1_ref[...], xb, preferred_element_type=jnp.float32)
        y = jnp.maximum(y * s1_ref[...] + b1_ref[...], 0.0)     # (c1+c2r+c3r, M)
        y1 = y[:c1]                                             # branch-1 result
        red = y[c1:]                                            # [b2_red | b3_red], sublane-aligned slice

        # ---- merged 3x3 convs: 9 shifted matmuls with block-diagonal weights -
        acc = jnp.zeros((c2 + c3, M), jnp.float32)
        for k, (oy, ox) in enumerate(taps):
            t = shifted(red, oy, ox)
            mk = tap_mask(oy, ox)
            if mk is not None:
                t = jnp.where(mk, t, 0.0)                       # zero-pad semantics
            acc = acc + jnp.dot(wc_ref[k], t.astype(jnp.bfloat16),
                                preferred_element_type=jnp.float32)
        yc = jnp.maximum(acc * sc_ref[...] + bc_ref[...], 0.0)  # (c2+c3, M)

        # ---- 3x3 / stride-1 / pad-1 max pool (separable), then 1x1 conv ------
        hmax = x
        hmax = jnp.maximum(hmax, jnp.where(col_ok[-1], shifted(x, 0, -1), -jnp.inf))
        hmax = jnp.maximum(hmax, jnp.where(col_ok[1],  shifted(x, 0, 1),  -jnp.inf))
        pooled = hmax
        pooled = jnp.maximum(pooled, jnp.where(row_ok[-1], shifted(hmax, -1, 0), -jnp.inf))
        pooled = jnp.maximum(pooled, jnp.where(row_ok[1],  shifted(hmax, 1, 0),  -jnp.inf))
        y4 = jnp.dot(wp_ref[...], pooled.astype(jnp.bfloat16),
                     preferred_element_type=jnp.float32)
        y4 = jnp.maximum(y4 * sp_ref[...] + bp_ref[...], 0.0)   # (cp, M)

        # ---- single dense 256-lane store of the concatenated branch block ----
        o_ref[0] = jnp.concatenate([y1, yc, y4], axis=0).astype(o_ref.dtype)

    return kernel


# ----------------------------- forward wrapper ------------------------------ #

def inception_forward(x_nchw, params):
    n, cin, h, w = x_nchw.shape
    m = h * w
    x = x_nchw.reshape(n, cin, m)                        # free reshape (NCHW-native)

    p1, p2r, p2c = params["b1"], params["b2_reduce"], params["b2_conv"]
    p3r, p3c, p4 = params["b3_reduce"], params["b3_conv"], params["b4"]

    c1 = p1["w"].shape[-1]
    c2r, c2 = p2r["w"].shape[-1], p2c["w"].shape[-1]
    c3r, c3 = p3r["w"].shape[-1], p3c["w"].shape[-1]
    cp = p4["w"].shape[-1]
    ctot = c1 + c2 + c3 + cp
    bf16 = jnp.bfloat16

    # fused 1x1 convs that read X, transposed for  y^T = W^T @ X
    w1 = jnp.concatenate([p1["w"], p2r["w"], p3r["w"]], axis=-1).T.astype(bf16)
    s1 = jnp.concatenate([p1["scale"], p2r["scale"], p3r["scale"]], axis=-1).T
    b1 = jnp.concatenate([p1["bias"], p2r["bias"], p3r["bias"]], axis=-1).T

    # merged 3x3 branches: per-tap block-diagonal transposed weights
    wc = jnp.zeros((9, c2 + c3, c2r + c3r), jnp.float32)
    wc = wc.at[:, :c2, :c2r].set(jnp.transpose(p2c["w"], (0, 2, 1)))
    wc = wc.at[:, c2:, c2r:].set(jnp.transpose(p3c["w"], (0, 2, 1)))
    wc = wc.astype(bf16)
    sc = jnp.concatenate([p2c["scale"], p3c["scale"]], axis=-1).T
    bc = jnp.concatenate([p2c["bias"], p3c["bias"]], axis=-1).T

    wp = p4["w"].T.astype(bf16)
    sp, bp = p4["scale"].T, p4["bias"].T

    kernel = _make_inception_kernel(h, w, cin, c1, c2r, c2, c3r, c3, cp)

    def resident(arr):       # full array, same VMEM block for every grid step
        nd = arr.ndim
        return pl.BlockSpec(arr.shape, lambda i, _nd=nd: (0,) * _nd)

    flops = 2 * n * m * (cin * (c1 + c2r + c3r) + 9 * (c2r * c2 + c3r * c3) + cin * cp)
    bytes_accessed = 4 * n * m * (cin + ctot) + 2 * (int(w1.size) + int(wc.size) + int(wp.size))

    out = pl.pallas_call(
        kernel,
        out_shape=jax.ShapeDtypeStruct((n, ctot, m), jnp.float32),
        grid_spec=pltpu.PrefetchScalarGridSpec(
            num_scalar_prefetch=0,
            grid=(n,),
            in_specs=[pl.BlockSpec((1, cin, m), lambda i: (i, 0, 0)),
                      resident(w1), resident(s1), resident(b1),
                      resident(wc), resident(sc), resident(bc),
                      resident(wp), resident(sp), resident(bp)],
            out_specs=pl.BlockSpec((1, ctot, m), lambda i: (i, 0, 0))),
        compiler_params=pltpu.CompilerParams(
            dimension_semantics=("parallel",)),
        cost_estimate=pl.CostEstimate(flops=int(flops), transcendentals=0,
                                      bytes_accessed=int(bytes_accessed)),
    )(x, w1, s1, b1, wc, sc, bc, wp, sp, bp)

    return out.reshape(n, ctot, h, w)                    # free, contiguous reshape


# --------------------------- deterministic params --------------------------- #

def make_cnr_params(key, cin, cout, ksize, eps=1e-5):
    kw, kb, kg, kbt, km, kv = jax.random.split(key, 6)
    fan_in = cin * ksize * ksize
    w = jax.random.normal(kw, (ksize, ksize, cin, cout), jnp.float32) / np.sqrt(fan_in)
    b = 0.1 * jax.random.normal(kb, (cout,), jnp.float32)
    gamma = 1.0 + 0.1 * jax.random.normal(kg, (cout,), jnp.float32)
    beta = 0.1 * jax.random.normal(kbt, (cout,), jnp.float32)
    mean = 0.1 * jax.random.normal(km, (cout,), jnp.float32)
    var = 1.0 + 0.1 * jnp.abs(jax.random.normal(kv, (cout,), jnp.float32))
    scale = gamma / jnp.sqrt(var + eps)                  # folded BN (eval mode)
    bias = (b - mean) * scale + beta
    w_k = w[0, 0] if ksize == 1 else w.reshape(ksize * ksize, cin, cout)
    return {"w": w_k,
            "scale": scale.reshape(1, cout),
            "bias": bias.reshape(1, cout)}


# ----------------------------- pure-JAX reference --------------------------- #

def _ref_cnr1x1(x_nhwc, p):
    y = jnp.einsum("nhwc,co->nhwo", x_nhwc, p["w"])
    return jnp.maximum(y * p["scale"].reshape(1, 1, 1, -1)
                       + p["bias"].reshape(1, 1, 1, -1), 0.0)


def _ref_cnr3x3(x_nhwc, p):
    cin = x_nhwc.shape[-1]
    w = p["w"].reshape(3, 3, cin, -1)
    y = lax.conv_general_dilated(x_nhwc, w, (1, 1), ((1, 1), (1, 1)),
                                 dimension_numbers=("NHWC", "HWIO", "NHWC"))
    return jnp.maximum(y * p["scale"].reshape(1, 1, 1, -1)
                       + p["bias"].reshape(1, 1, 1, -1), 0.0)


def inception_ref(x_nchw, params):
    x = jnp.transpose(x_nchw, (0, 2, 3, 1))
    y1 = _ref_cnr1x1(x, params["b1"])
    y2 = _ref_cnr3x3(_ref_cnr1x1(x, params["b2_reduce"]), params["b2_conv"])
    y3 = _ref_cnr3x3(_ref_cnr1x1(x, params["b3_reduce"]), params["b3_conv"])
    pooled = lax.reduce_window(x, -jnp.inf, lax.max, (1, 3, 3, 1), (1, 1, 1, 1),
                               padding=((0, 0), (1, 1), (1, 1), (0, 0)))
    y4 = _ref_cnr1x1(pooled, params["b4"])
    out = jnp.concatenate([y1, y2, y3, y4], axis=-1)
    return jnp.transpose(out, (0, 3, 1, 2))


# ----------------------------------- main ----------------------------------- #

if __name__ == "__main__":
    key = jax.random.PRNGKey(0)
    in_channels, onex1, t3r, t3, f5r, f5, pool = 4, 8, 4, 8, 4, 8, 8
    kx, k1, k2a, k2b, k3a, k3b, k4 = jax.random.split(key, 7)

    x = jax.random.normal(kx, (2, in_channels, 16, 16), jnp.float32)

    params = {
        "b1":        make_cnr_params(k1, in_channels, onex1, 1),
        "b2_reduce": make_cnr_params(k2a, in_channels, t3r, 1),
        "b2_conv":   make_cnr_params(k2b, t3r, t3, 3),
        "b3_reduce": make_cnr_params(k3a, in_channels, f5r, 1),
        "b3_conv":   make_cnr_params(k3b, f5r, f5, 3),   # source uses k=3 here
        "b4":        make_cnr_params(k4, in_channels, pool, 1),
    }

    fwd = jax.jit(inception_forward)
    out = jax.block_until_ready(fwd(x, params))
    assert out.shape == (2, onex1 + t3 + f5 + pool, 16, 16), out.shape

    ref = inception_ref(x, params)
    # Tolerance loosened for bf16 MXU operands (f32 accumulation / BN / ReLU).
    np.testing.assert_allclose(np.asarray(out), np.asarray(ref),
                               atol=1e-1, rtol=2e-2)
    print("KERNEL_OK")
</pallas_src>

<mosaic_0001>
module attributes {stable_mosaic.version = 11 : i64} {
  func.func @kernel(%arg0: i32, %arg1: memref<1x4x256xf32, #tpu.memory_space<vmem>>, %arg2: memref<16x4xbf16, #tpu.memory_space<vmem>>, %arg3: memref<16x1xf32, #tpu.memory_space<vmem>>, %arg4: memref<16x1xf32, #tpu.memory_space<vmem>>, %arg5: memref<9x16x8xbf16, #tpu.memory_space<vmem>>, %arg6: memref<16x1xf32, #tpu.memory_space<vmem>>, %arg7: memref<16x1xf32, #tpu.memory_space<vmem>>, %arg8: memref<8x4xbf16, #tpu.memory_space<vmem>>, %arg9: memref<8x1xf32, #tpu.memory_space<vmem>>, %arg10: memref<8x1xf32, #tpu.memory_space<vmem>>, %arg11: memref<1x32x256xf32, #tpu.memory_space<vmem>>) attributes {dimension_semantics = [#tpu.dimension_semantics<parallel>], iteration_bounds = array<i64: 2>, scalar_prefetch = 0 : i64, scratch_operands = 0 : i64, tpu.core_type = #tpu.core_type<tc>, window_params = [{transform_indices = @transform_0, window_bounds = array<i64: 1, 4, 256>}, {pipeline_mode = #tpu.pipeline_mode<synchronous>, transform_indices = @transform_1, window_bounds = array<i64: 16, 4>}, {pipeline_mode = #tpu.pipeline_mode<synchronous>, transform_indices = @transform_2, window_bounds = array<i64: 16, 1>}, {pipeline_mode = #tpu.pipeline_mode<synchronous>, transform_indices = @transform_3, window_bounds = array<i64: 16, 1>}, {pipeline_mode = #tpu.pipeline_mode<synchronous>, transform_indices = @transform_4, window_bounds = array<i64: 9, 16, 8>}, {pipeline_mode = #tpu.pipeline_mode<synchronous>, transform_indices = @transform_5, window_bounds = array<i64: 16, 1>}, {pipeline_mode = #tpu.pipeline_mode<synchronous>, transform_indices = @transform_6, window_bounds = array<i64: 16, 1>}, {pipeline_mode = #tpu.pipeline_mode<synchronous>, transform_indices = @transform_7, window_bounds = array<i64: 8, 4>}, {pipeline_mode = #tpu.pipeline_mode<synchronous>, transform_indices = @transform_8, window_bounds = array<i64: 8, 1>}, {pipeline_mode = #tpu.pipeline_mode<synchronous>, transform_indices = @transform_9, window_bounds = array<i64: 8, 1>}, {transform_indices = @transform_10, window_bounds = array<i64: 1, 32, 256>}]} {
    %c0 = arith.constant 0 : index
    %c0_0 = arith.constant 0 : index
    %c0_1 = arith.constant 0 : index
    %0 = vector.load %arg1[%c0, %c0_0, %c0_1] : memref<1x4x256xf32, #tpu.memory_space<vmem>>, vector<1x4x256xf32>
    %1 = vector.shape_cast %0 : vector<1x4x256xf32> to vector<4x256xf32>
    %2 = tpu.iota {dimensions = array<i32: 1>} : vector<1x256xi32>
    %c15_i32 = arith.constant 15 : i32
    %3 = vector.broadcast %c15_i32 : i32 to vector<1x256xi32>
    %4 = arith.andi %2, %3 : vector<1x256xi32>
    %c16_i32 = arith.constant 16 : i32
    %5 = vector.broadcast %c16_i32 : i32 to vector<1x256xi32>
    %6 = arith.cmpi sge, %2, %5 : vector<1x256xi32>
    %c240_i32 = arith.constant 240 : i32
    %7 = vector.broadcast %c240_i32 : i32 to vector<1x256xi32>
    %8 = arith.cmpi slt, %2, %7 : vector<1x256xi32>
    %c0_i32 = arith.constant 0 : i32
    %9 = vector.broadcast %c0_i32 : i32 to vector<1x256xi32>
    %10 = arith.cmpi sgt, %4, %9 : vector<1x256xi32>
    %c15_i32_2 = arith.constant 15 : i32
    %11 = vector.broadcast %c15_i32_2 : i32 to vector<1x256xi32>
    %12 = arith.cmpi slt, %4, %11 : vector<1x256xi32>
    %13 = arith.truncf %1 : vector<4x256xf32> to vector<4x256xbf16>
    %c0_3 = arith.constant 0 : index
    %c0_4 = arith.constant 0 : index
    %14 = vector.load %arg2[%c0_3, %c0_4] : memref<16x4xbf16, #tpu.memory_space<vmem>>, vector<16x4xbf16>
    %cst = arith.constant dense<0.000000e+00> : vector<16x256xf32>
    %15 = tpu.matmul %14, %13, %cst {dimension_numbers = #tpu.dot_dimension_numbers<[1], [0], [0], [1], [0, 0, 1, 1], [], []>} : vector<16x4xbf16>, vector<4x256xbf16>, vector<16x256xf32> -> vector<16x256xf32>
    %c0_5 = arith.constant 0 : index
    %c0_6 = arith.constant 0 : index
    %16 = vector.load %arg3[%c0_5, %c0_6] : memref<16x1xf32, #tpu.memory_space<vmem>>, vector<16x1xf32>
    %17 = vector.broadcast %16 : vector<16x1xf32> to vector<16x256xf32>
    %18 = arith.mulf %15, %17 : vector<16x256xf32>
    %c0_7 = arith.constant 0 : index
    %c0_8 = arith.constant 0 : index
    %19 = vector.load %arg4[%c0_7, %c0_8] : memref<16x1xf32, #tpu.memory_space<vmem>>, vector<16x1xf32>
    %20 = vector.broadcast %19 : vector<16x1xf32> to vector<16x256xf32>
    %21 = arith.addf %18, %20 : vector<16x256xf32>
    %cst_9 = arith.constant 0.000000e+00 : f32
    %22 = vector.broadcast %cst_9 : f32 to vector<16x256xf32>
    %23 = arith.maximumf %21, %22 : vector<16x256xf32>
    %24 = vector.extract_strided_slice %23 {offsets = [0, 0], sizes = [8, 256], strides = [1, 1]} : vector<16x256xf32> to vector<8x256xf32>
    %25 = vector.extract_strided_slice %23 {offsets = [8, 0], sizes = [8, 256], strides = [1, 1]} : vector<16x256xf32> to vector<8x256xf32>
    %cst_10 = arith.constant 0.000000e+00 : f32
    %26 = vector.broadcast %cst_10 : f32 to vector<16x256xf32>
    %c17_i32 = arith.constant 17 : i32
    %27 = tpu.dynamic_rotate %25 by %c17_i32 dim 1 : vector<8x256xf32>, i32 -> vector<8x256xf32>
    %28 = arith.andi %6, %10 : vector<1x256xi1>
    %cst_11 = arith.constant 0.000000e+00 : f32
    %29 = vector.shape_cast %28 : vector<1x256xi1> to vector<1x256xi1>
    %30 = vector.broadcast %29 : vector<1x256xi1> to vector<8x256xi1>
    %31 = vector.broadcast %cst_11 : f32 to vector<8x256xf32>
    %32 = arith.select %30, %27, %31 : vector<8x256xi1>, vector<8x256xf32>
    %c0_12 = arith.constant 0 : index
    %c0_13 = arith.constant 0 : index
    %c0_14 = arith.constant 0 : index
    %33 = vector.load %arg5[%c0_12, %c0_13, %c0_14] : memref<9x16x8xbf16, #tpu.memory_space<vmem>>, vector<1x16x8xbf16>
    %34 = vector.shape_cast %33 : vector<1x16x8xbf16> to vector<16x8xbf16>
    %35 = arith.truncf %32 : vector<8x256xf32> to vector<8x256xbf16>
    %cst_15 = arith.constant dense<0.000000e+00> : vector<16x256xf32>
    %36 = tpu.matmul %34, %35, %cst_15 {dimension_numbers = #tpu.dot_dimension_numbers<[1], [0], [0], [1], [0, 0, 1, 1], [], []>} : vector<16x8xbf16>, vector<8x256xbf16>, vector<16x256xf32> -> vector<16x256xf32>
    %37 = arith.addf %26, %36 : vector<16x256xf32>
    %c16_i32_16 = arith.constant 16 : i32
    %38 = tpu.dynamic_rotate %25 by %c16_i32_16 dim 1 : vector<8x256xf32>, i32 -> vector<8x256xf32>
    %cst_17 = arith.constant 0.000000e+00 : f32
    %39 = vector.shape_cast %6 : vector<1x256xi1> to vector<1x256xi1>
    %40 = vector.broadcast %39 : vector<1x256xi1> to vector<8x256xi1>
    %41 = vector.broadcast %cst_17 : f32 to vector<8x256xf32>
    %42 = arith.select %40, %38, %41 : vector<8x256xi1>, vector<8x256xf32>
    %c1 = arith.constant 1 : index
    %c0_18 = arith.constant 0 : index
    %c0_19 = arith.constant 0 : index
    %43 = vector.load %arg5[%c1, %c0_18, %c0_19] : memref<9x16x8xbf16, #tpu.memory_space<vmem>>, vector<1x16x8xbf16>
    %44 = vector.shape_cast %43 : vector<1x16x8xbf16> to vector<16x8xbf16>
    %45 = arith.truncf %42 : vector<8x256xf32> to vector<8x256xbf16>
    %cst_20 = arith.constant dense<0.000000e+00> : vector<16x256xf32>
    %46 = tpu.matmul %44, %45, %cst_20 {dimension_numbers = #tpu.dot_dimension_numbers<[1], [0], [0], [1], [0, 0, 1, 1], [], []>} : vector<16x8xbf16>, vector<8x256xbf16>, vector<16x256xf32> -> vector<16x256xf32>
    %47 = arith.addf %37, %46 : vector<16x256xf32>
    %c15_i32_21 = arith.constant 15 : i32
    %48 = tpu.dynamic_rotate %25 by %c15_i32_21 dim 1 : vector<8x256xf32>, i32 -> vector<8x256xf32>
    %49 = arith.andi %6, %12 : vector<1x256xi1>
    %cst_22 = arith.constant 0.000000e+00 : f32
    %50 = vector.shape_cast %49 : vector<1x256xi1> to vector<1x256xi1>
    %51 = vector.broadcast %50 : vector<1x256xi1> to vector<8x256xi1>
    %52 = vector.broadcast %cst_22 : f32 to vector<8x256xf32>
    %53 = arith.select %51, %48, %52 : vector<8x256xi1>, vector<8x256xf32>
    %c2 = arith.constant 2 : index
    %c0_23 = arith.constant 0 : index
    %c0_24 = arith.constant 0 : index
    %54 = vector.load %arg5[%c2, %c0_23, %c0_24] : memref<9x16x8xbf16, #tpu.memory_space<vmem>>, vector<1x16x8xbf16>
    %55 = vector.shape_cast %54 : vector<1x16x8xbf16> to vector<16x8xbf16>
    %56 = arith.truncf %53 : vector<8x256xf32> to vector<8x256xbf16>
    %cst_25 = arith.constant dense<0.000000e+00> : vector<16x256xf32>
    %57 = tpu.matmul %55, %56, %cst_25 {dimension_numbers = #tpu.dot_dimension_numbers<[1], [0], [0], [1], [0, 0, 1, 1], [], []>} : vector<16x8xbf16>, vector<8x256xbf16>, vector<16x256xf32> -> vector<16x256xf32>
    %58 = arith.addf %47, %57 : vector<16x256xf32>
    %c1_i32 = arith.constant 1 : i32
    %59 = tpu.dynamic_rotate %25 by %c1_i32 dim 1 : vector<8x256xf32>, i32 -> vector<8x256xf32>
    %cst_26 = arith.constant 0.000000e+00 : f32
    %60 = vector.shape_cast %10 : vector<1x256xi1> to vector<1x256xi1>
    %61 = vector.broadcast %60 : vector<1x256xi1> to vector<8x256xi1>
    %62 = vector.broadcast %cst_26 : f32 to vector<8x256xf32>
    %63 = arith.select %61, %59, %62 : vector<8x256xi1>, vector<8x256xf32>
    %c3 = arith.constant 3 : index
    %c0_27 = arith.constant 0 : index
    %c0_28 = arith.constant 0 : index
    %64 = vector.load %arg5[%c3, %c0_27, %c0_28] : memref<9x16x8xbf16, #tpu.memory_space<vmem>>, vector<1x16x8xbf16>
    %65 = vector.shape_cast %64 : vector<1x16x8xbf16> to vector<16x8xbf16>
    %66 = arith.truncf %63 : vector<8x256xf32> to vector<8x256xbf16>
    %cst_29 = arith.constant dense<0.000000e+00> : vector<16x256xf32>
    %67 = tpu.matmul %65, %66, %cst_29 {dimension_numbers = #tpu.dot_dimension_numbers<[1], [0], [0], [1], [0, 0, 1, 1], [], []>} : vector<16x8xbf16>, vector<8x256xbf16>, vector<16x256xf32> -> vector<16x256xf32>
    %68 = arith.addf %58, %67 : vector<16x256xf32>
    %c4 = arith.constant 4 : index
    %c0_30 = arith.constant 0 : index
    %c0_31 = arith.constant 0 : index
    %69 = vector.load %arg5[%c4, %c0_30, %c0_31] : memref<9x16x8xbf16, #tpu.memory_space<vmem>>, vector<1x16x8xbf16>
    %70 = vector.shape_cast %69 : vector<1x16x8xbf16> to vector<16x8xbf16>
    %71 = arith.truncf %25 : vector<8x256xf32> to vector<8x256xbf16>
    %cst_32 = arith.constant dense<0.000000e+00> : vector<16x256xf32>
    %72 = tpu.matmul %70, %71, %cst_32 {dimension_numbers = #tpu.dot_dimension_numbers<[1], [0], [0], [1], [0, 0, 1, 1], [], []>} : vector<16x8xbf16>, vector<8x256xbf16>, vector<16x256xf32> -> vector<16x256xf32>
    %73 = arith.addf %68, %72 : vector<16x256xf32>
    %c255_i32 = arith.constant 255 : i32
    %74 = tpu.dynamic_rotate %25 by %c255_i32 dim 1 : vector<8x256xf32>, i32 -> vector<8x256xf32>
    %cst_33 = arith.constant 0.000000e+00 : f32
    %75 = vector.shape_cast %12 : vector<1x256xi1> to vector<1x256xi1>
    %76 = vector.broadcast %75 : vector<1x256xi1> to vector<8x256xi1>
    %77 = vector.broadcast %cst_33 : f32 to vector<8x256xf32>
    %78 = arith.select %76, %74, %77 : vector<8x256xi1>, vector<8x256xf32>
    %c5 = arith.constant 5 : index
    %c0_34 = arith.constant 0 : index
    %c0_35 = arith.constant 0 : index
    %79 = vector.load %arg5[%c5, %c0_34, %c0_35] : memref<9x16x8xbf16, #tpu.memory_space<vmem>>, vector<1x16x8xbf16>
    %80 = vector.shape_cast %79 : vector<1x16x8xbf16> to vector<16x8xbf16>
    %81 = arith.truncf %78 : vector<8x256xf32> to vector<8x256xbf16>
    %cst_36 = arith.constant dense<0.000000e+00> : vector<16x256xf32>
    %82 = tpu.matmul %80, %81, %cst_36 {dimension_numbers = #tpu.dot_dimension_numbers<[1], [0], [0], [1], [0, 0, 1, 1], [], []>} : vector<16x8xbf16>, vector<8x256xbf16>, vector<16x256xf32> -> vector<16x256xf32>
    %83 = arith.addf %73, %82 : vector<16x256xf32>
    %c241_i32 = arith.constant 241 : i32
    %84 = tpu.dynamic_rotate %25 by %c241_i32 dim 1 : vector<8x256xf32>, i32 -> vector<8x256xf32>
    %85 = arith.andi %8, %10 : vector<1x256xi1>
    %cst_37 = arith.constant 0.000000e+00 : f32
    %86 = vector.shape_cast %85 : vector<1x256xi1> to vector<1x256xi1>
    %87 = vector.broadcast %86 : vector<1x256xi1> to vector<8x256xi1>
    %88 = vector.broadcast %cst_37 : f32 to vector<8x256xf32>
    %89 = arith.select %87, %84, %88 : vector<8x256xi1>, vector<8x256xf32>
    %c6 = arith.constant 6 : index
    %c0_38 = arith.constant 0 : index
    %c0_39 = arith.constant 0 : index
    %90 = vector.load %arg5[%c6, %c0_38, %c0_39] : memref<9x16x8xbf16, #tpu.memory_space<vmem>>, vector<1x16x8xbf16>
    %91 = vector.shape_cast %90 : vector<1x16x8xbf16> to vector<16x8xbf16>
    %92 = arith.truncf %89 : vector<8x256xf32> to vector<8x256xbf16>
    %cst_40 = arith.constant dense<0.000000e+00> : vector<16x256xf32>
    %93 = tpu.matmul %91, %92, %cst_40 {dimension_numbers = #tpu.dot_dimension_numbers<[1], [0], [0], [1], [0, 0, 1, 1], [], []>} : vector<16x8xbf16>, vector<8x256xbf16>, vector<16x256xf32> -> vector<16x256xf32>
    %94 = arith.addf %83, %93 : vector<16x256xf32>
    %c240_i32_41 = arith.constant 240 : i32
    %95 = tpu.dynamic_rotate %25 by %c240_i32_41 dim 1 : vector<8x256xf32>, i32 -> vector<8x256xf32>
    %cst_42 = arith.constant 0.000000e+00 : f32
    %96 = vector.shape_cast %8 : vector<1x256xi1> to vector<1x256xi1>
    %97 = vector.broadcast %96 : vector<1x256xi1> to vector<8x256xi1>
    %98 = vector.broadcast %cst_42 : f32 to vector<8x256xf32>
    %99 = arith.select %97, %95, %98 : vector<8x256xi1>, vector<8x256xf32>
    %c7 = arith.constant 7 : index
    %c0_43 = arith.constant 0 : index
    %c0_44 = arith.constant 0 : index
    %100 = vector.load %arg5[%c7, %c0_43, %c0_44] : memref<9x16x8xbf16, #tpu.memory_space<vmem>>, vector<1x16x8xbf16>
    %101 = vector.shape_cast %100 : vector<1x16x8xbf16> to vector<16x8xbf16>
    %102 = arith.truncf %99 : vector<8x256xf32> to vector<8x256xbf16>
    %cst_45 = arith.constant dense<0.000000e+00> : vector<16x256xf32>
    %103 = tpu.matmul %101, %102, %cst_45 {dimension_numbers = #tpu.dot_dimension_numbers<[1], [0], [0], [1], [0, 0, 1, 1], [], []>} : vector<16x8xbf16>, vector<8x256xbf16>, vector<16x256xf32> -> vector<16x256xf32>
    %104 = arith.addf %94, %103 : vector<16x256xf32>
    %c239_i32 = arith.constant 239 : i32
    %105 = tpu.dynamic_rotate %25 by %c239_i32 dim 1 : vector<8x256xf32>, i32 -> vector<8x256xf32>
    %106 = arith.andi %8, %12 : vector<1x256xi1>
    %cst_46 = arith.constant 0.000000e+00 : f32
    %107 = vector.shape_cast %106 : vector<1x256xi1> to vector<1x256xi1>
    %108 = vector.broadcast %107 : vector<1x256xi1> to vector<8x256xi1>
    %109 = vector.broadcast %cst_46 : f32 to vector<8x256xf32>
    %110 = arith.select %108, %105, %109 : vector<8x256xi1>, vector<8x256xf32>
    %c8 = arith.constant 8 : index
    %c0_47 = arith.constant 0 : index
    %c0_48 = arith.constant 0 : index
    %111 = vector.load %arg5[%c8, %c0_47, %c0_48] : memref<9x16x8xbf16, #tpu.memory_space<vmem>>, vector<1x16x8xbf16>
    %112 = vector.shape_cast %111 : vector<1x16x8xbf16> to vector<16x8xbf16>
    %113 = arith.truncf %110 : vector<8x256xf32> to vector<8x256xbf16>
    %cst_49 = arith.constant dense<0.000000e+00> : vector<16x256xf32>
    %114 = tpu.matmul %112, %113, %cst_49 {dimension_numbers = #tpu.dot_dimension_numbers<[1], [0], [0], [1], [0, 0, 1, 1], [], []>} : vector<16x8xbf16>, vector<8x256xbf16>, vector<16x256xf32> -> vector<16x256xf32>
    %115 = arith.addf %104, %114 : vector<16x256xf32>
    %c0_50 = arith.constant 0 : index
    %c0_51 = arith.constant 0 : index
    %116 = vector.load %arg6[%c0_50, %c0_51] : memref<16x1xf32, #tpu.memory_space<vmem>>, vector<16x1xf32>
    %117 = vector.broadcast %116 : vector<16x1xf32> to vector<16x256xf32>
    %118 = arith.mulf %115, %117 : vector<16x256xf32>
    %c0_52 = arith.constant 0 : index
    %c0_53 = arith.constant 0 : index
    %119 = vector.load %arg7[%c0_52, %c0_53] : memref<16x1xf32, #tpu.memory_space<vmem>>, vector<16x1xf32>
    %120 = vector.broadcast %119 : vector<16x1xf32> to vector<16x256xf32>
    %121 = arith.addf %118, %120 : vector<16x256xf32>
    %cst_54 = arith.constant 0.000000e+00 : f32
    %122 = vector.broadcast %cst_54 : f32 to vector<16x256xf32>
    %123 = arith.maximumf %121, %122 : vector<16x256xf32>
    %c1_i32_55 = arith.constant 1 : i32
    %124 = tpu.dynamic_rotate %1 by %c1_i32_55 dim 1 : vector<4x256xf32>, i32 -> vector<4x256xf32>
    %cst_56 = arith.constant 0xFF800000 : f32
    %125 = vector.shape_cast %10 : vector<1x256xi1> to vector<1x256xi1>
    %126 = vector.broadcast %125 : vector<1x256xi1> to vector<4x256xi1>
    %127 = vector.broadcast %cst_56 : f32 to vector<4x256xf32>
    %128 = arith.select %126, %124, %127 : vector<4x256xi1>, vector<4x256xf32>
    %129 = arith.maximumf %1, %128 : vector<4x256xf32>
    %c255_i32_57 = arith.constant 255 : i32
    %130 = tpu.dynamic_rotate %1 by %c255_i32_57 dim 1 : vector<4x256xf32>, i32 -> vector<4x256xf32>
    %cst_58 = arith.constant 0xFF800000 : f32
    %131 = vector.shape_cast %12 : vector<1x256xi1> to vector<1x256xi1>
    %132 = vector.broadcast %131 : vector<1x256xi1> to vector<4x256xi1>
    %133 = vector.broadcast %cst_58 : f32 to vector<4x256xf32>
    %134 = arith.select %132, %130, %133 : vector<4x256xi1>, vector<4x256xf32>
    %135 = arith.maximumf %129, %134 : vector<4x256xf32>
    %c16_i32_59 = arith.constant 16 : i32
    %136 = tpu.dynamic_rotate %135 by %c16_i32_59 dim 1 : vector<4x256xf32>, i32 -> vector<4x256xf32>
    %cst_60 = arith.constant 0xFF800000 : f32
    %137 = vector.shape_cast %6 : vector<1x256xi1> to vector<1x256xi1>
    %138 = vector.broadcast %137 : vector<1x256xi1> to vector<4x256xi1>
    %139 = vector.broadcast %cst_60 : f32 to vector<4x256xf32>
    %140 = arith.select %138, %136, %139 : vector<4x256xi1>, vector<4x256xf32>
    %141 = arith.maximumf %135, %140 : vector<4x256xf32>
    %c240_i32_61 = arith.constant 240 : i32
    %142 = tpu.dynamic_rotate %135 by %c240_i32_61 dim 1 : vector<4x256xf32>, i32 -> vector<4x256xf32>
    %cst_62 = arith.constant 0xFF800000 : f32
    %143 = vector.shape_cast %8 : vector<1x256xi1> to vector<1x256xi1>
    %144 = vector.broadcast %143 : vector<1x256xi1> to vector<4x256xi1>
    %145 = vector.broadcast %cst_62 : f32 to vector<4x256xf32>
    %146 = arith.select %144, %142, %145 : vector<4x256xi1>, vector<4x256xf32>
    %147 = arith.maximumf %141, %146 : vector<4x256xf32>
    %c0_63 = arith.constant 0 : index
    %c0_64 = arith.constant 0 : index
    %148 = vector.load %arg8[%c0_63, %c0_64] : memref<8x4xbf16, #tpu.memory_space<vmem>>, vector<8x4xbf16>
    %149 = arith.truncf %147 : vector<4x256xf32> to vector<4x256xbf16>
    %cst_65 = arith.constant dense<0.000000e+00> : vector<8x256xf32>
    %150 = tpu.matmul %148, %149, %cst_65 {dimension_numbers = #tpu.dot_dimension_numbers<[1], [0], [0], [1], [0, 0, 1, 1], [], []>} : vector<8x4xbf16>, vector<4x256xbf16>, vector<8x256xf32> -> vector<8x256xf32>
    %c0_66 = arith.constant 0 : index
    %c0_67 = arith.constant 0 : index
    %151 = vector.load %arg9[%c0_66, %c0_67] : memref<8x1xf32, #tpu.memory_space<vmem>>, vector<8x1xf32>
    %152 = vector.broadcast %151 : vector<8x1xf32> to vector<8x256xf32>
    %153 = arith.mulf %150, %152 : vector<8x256xf32>
    %c0_68 = arith.constant 0 : index
    %c0_69 = arith.constant 0 : index
    %154 = vector.load %arg10[%c0_68, %c0_69] : memref<8x1xf32, #tpu.memory_space<vmem>>, vector<8x1xf32>
    %155 = vector.broadcast %154 : vector<8x1xf32> to vector<8x256xf32>
    %156 = arith.addf %153, %155 : vector<8x256xf32>
    %cst_70 = arith.constant 0.000000e+00 : f32
    %157 = vector.broadcast %cst_70 : f32 to vector<8x256xf32>
    %158 = arith.maximumf %156, %157 : vector<8x256xf32>
    %159 = tpu.concatenate %24, %123, %158 in 0 : vector<8x256xf32>, vector<16x256xf32>, vector<8x256xf32> -> vector<32x256xf32>
    %c0_71 = arith.constant 0 : index
    %c0_72 = arith.constant 0 : index
    %c0_73 = arith.constant 0 : index
    %160 = vector.load %arg11[%c0_71, %c0_72, %c0_73] : memref<1x32x256xf32, #tpu.memory_space<vmem>>, vector<1x32x256xf32>
    %161 = vector.shape_cast %160 : vector<1x32x256xf32> to vector<32x256xf32>
    %162 = vector.shape_cast %159 : vector<32x256xf32> to vector<1x32x256xf32>
    tpu.vector_store %arg11[%c0_71, %c0_72, %c0_73], %162 {strides = array<i32>} : memref<1x32x256xf32, #tpu.memory_space<vmem>>, vector<1x32x256xf32>,
    return
  }
  func.func @transform_0(%arg0: i32) -> (i32, i32, i32) {
    %c0_i32 = arith.constant 0 : i32
    %c0_i32_0 = arith.constant 0 : i32
    %c0_i32_1 = arith.constant 0 : i32
    return %arg0, %c0_i32, %c0_i32_0 : i32, i32, i32
  }
  func.func @transform_1(%arg0: i32) -> (i32, i32) {
    %c0_i32 = arith.constant 0 : i32
    %c0_i32_0 = arith.constant 0 : i32
    %c0_i32_1 = arith.constant 0 : i32
    return %c0_i32, %c0_i32_0 : i32, i32
  }
  func.func @transform_2(%arg0: i32) -> (i32, i32) {
    %c0_i32 = arith.constant 0 : i32
    %c0_i32_0 = arith.constant 0 : i32
    %c0_i32_1 = arith.constant 0 : i32
    return %c0_i32, %c0_i32_0 : i32, i32
  }
  func.func @transform_3(%arg0: i32) -> (i32, i32) {
    %c0_i32 = arith.constant 0 : i32
    %c0_i32_0 = arith.constant 0 : i32
    %c0_i32_1 = arith.constant 0 : i32
    return %c0_i32, %c0_i32_0 : i32, i32
  }
  func.func @transform_4(%arg0: i32) -> (i32, i32, i32) {
    %c0_i32 = arith.constant 0 : i32
    %c0_i32_0 = arith.constant 0 : i32
    %c0_i32_1 = arith.constant 0 : i32
    %c0_i32_2 = arith.constant 0 : i32
    return %c0_i32, %c0_i32_0, %c0_i32_1 : i32, i32, i32
  }
  func.func @transform_5(%arg0: i32) -> (i32, i32) {
    %c0_i32 = arith.constant 0 : i32
    %c0_i32_0 = arith.constant 0 : i32
    %c0_i32_1 = arith.constant 0 : i32
    return %c0_i32, %c0_i32_0 : i32, i32
  }
  func.func @transform_6(%arg0: i32) -> (i32, i32) {
    %c0_i32 = arith.constant 0 : i32
    %c0_i32_0 = arith.constant 0 : i32
    %c0_i32_1 = arith.constant 0 : i32
    return %c0_i32, %c0_i32_0 : i32, i32
  }
  func.func @transform_7(%arg0: i32) -> (i32, i32) {
    %c0_i32 = arith.constant 0 : i32
    %c0_i32_0 = arith.constant 0 : i32
    %c0_i32_1 = arith.constant 0 : i32
    return %c0_i32, %c0_i32_0 : i32, i32
  }
  func.func @transform_8(%arg0: i32) -> (i32, i32) {
    %c0_i32 = arith.constant 0 : i32
    %c0_i32_0 = arith.constant 0 : i32
    %c0_i32_1 = arith.constant 0 : i32
    return %c0_i32, %c0_i32_0 : i32, i32
  }
  func.func @transform_9(%arg0: i32) -> (i32, i32) {
    %c0_i32 = arith.constant 0 : i32
    %c0_i32_0 = arith.constant 0 : i32
    %c0_i32_1 = arith.constant 0 : i32
    return %c0_i32, %c0_i32_0 : i32, i32
  }
  func.func @transform_10(%arg0: i32) -> (i32, i32, i32) {
    %c0_i32 = arith.constant 0 : i32
    %c0_i32_0 = arith.constant 0 : i32
    %c0_i32_1 = arith.constant 0 : i32
    return %arg0, %c0_i32, %c0_i32_0 : i32, i32, i32
  }
}

</mosaic_0001>

<bundles_post_ra>
// kernel: inception_forward.1
= control target key start
LH: loop header
LB: loop body
LE: loop exit
PB: predicated region body
PF: predicated region fallthrough
CT: control target
= control target key end

     0   :  { %s1500_s13 = smov 0   ;;  %s1799_s0 = inlined_call_operand.vmem [shape: f32[2,4,256], index: 0, kind: input, shape index: {}]   ;;  %s1800_s1 = inlined_call_operand.vmem [shape: bf16[16,4], index: 1, kind: input, shape index: {}]   ;;  %s1801_s2 = inlined_call_operand.vmem [shape: f32[16,1], index: 2, kind: input, shape index: {}]   ;;  %s1802_s3 = inlined_call_operand.vmem [shape: f32[16,1], index: 3, kind: input, shape index: {}]   ;;  %s1803_s4 = inlined_call_operand.vmem [shape: bf16[9,16,8], index: 4, kind: input, shape index: {}]   ;;  %s1804_s5 = inlined_call_operand.vmem [shape: f32[16,1], index: 5, kind: input, shape index: {}]   ;;  %s1805_s6 = inlined_call_operand.vmem [shape: f32[16,1], index: 6, kind: input, shape index: {}]   ;;  %s1806_s7 = inlined_call_operand.vmem [shape: bf16[8,4], index: 7, kind: input, shape index: {}]   ;;  %s1807_s8 = inlined_call_operand.vmem [shape: f32[8,1], index: 8, kind: input, shape index: {}]   ;;  %s1808_s9 = inlined_call_operand.vmem [shape: f32[8,1], index: 9, kind: input, shape index: {}]   ;;  %s1809_s10 = inlined_call_operand.vmem [shape: f32[2,32,256], index: 10, kind: output, shape index: {}]  }
   0x1 LB: > { %s1267_s14 = sadd.s32 4294967295, %s1434_s13   ;;  %p1271_p0 = scmp.ge.s32.totalorder %s1434_s13, 1  ;;  %s1434_s13 = sphi %s1500_s13, %s20_s13  }
   0x2   : > { %p312_p1 = scmp.lt.s32.totalorder %s1434_s13, 3 }
   0x4   : > { %p313_p2 = pnand %p1271_p0, %p312_p1 }
   0x5   : > { %p350_p3 = scmp.lt.s32.totalorder (!%p313_p2), %s1267_s14, 1  ;;  %s1437_s25 = smov (!%p313_p2), 1  }
   0x6   : > { %316 = sbr.rel (%p313_p2) target bundleno = 591 (0x24f), region = 60  ;;  %s1438_s26 = smov (!%p313_p2), 127  }
   0x7   : > { %s1439_s27 = smov (!%p313_p2), 15   ;;  %s1440_s28 = smov (!%p313_p2), 16  }
   0x8   : > { %s1441_s29 = smov (!%p313_p2), 112   ;;  %s1442_s30 = smov (!%p313_p2), 113  }
   0x9   : > { %s1443_s11 = smov (!%p313_p2), 17   ;;  %s1444_s12 = smov (!%p313_p2), 111  }
   0xb   : > { %v430_v0 = vld [vmem:[%s1801_s2 + $0x8] sm:$0xff]  ;;  %v1436_v1 = vmov 0   ;;  %s1819_s14 = smov (!%p350_p3, %s1267_s14), 1  ;;  %vm394_vm0 = vcmask 1041408   ;;  %v1358_v10 = vld [vmem:[%s1800_s1] sm:$0xff]  ;;  %vm390_vm1 = vcmask 31744   ;;  %v362_v30 = vlaneseq }
   0xc   : > { %1385 = vset.pattern.permute.xlu0 %v1436_v1  ;;  %1426 = vset.pattern.permute.xlu1 %v1436_v1  ;;  %s1356_s17 = sshll.u32 %s1819_s14, 3  ;;  %v446_v3 = vld [vmem:[%s1802_s3 + $0x8] sm:$0xff]  ;;  %vm511_vm9 = vcmask 1043456   ;;  %vm507_vm10 = vcmask 64512  }
   0xd   : > { %438 = vperm.xlu0 %1385, %v430_v0   ;;  %1427 = vset.pattern.permute.xlu2 %v1436_v1  ;;  %s354_s20 = scalar_lea.vmem %s1799_s0, %s1356_s17  ;;  %v1547_v31 = vand.u32 127, %v362_v30  ;;  %v1360_v57 = vld [vmem:[%s1803_s4 + $0x8] sm:$0xff] }
   0xe   : > { %v1517_v2 = vld [vmem:[%s354_s20] sm:$0xff] }
   0xf   : > { %376 = vst [vmem:[#allocation1] ss:$2 sm:$0xff] %v1517_v2  ;;  %v1550_v32 = vadd.s32 128, %v1547_v31  ;;  %v365_v34 = vand.u32 15, %v1547_v31  ;;  %vm592_vm2 = vcmp.lt.s32.totalorder %v1547_v31, 15  ;;  %vm367_vm4 = vcmp.ge.s32.totalorder %v1547_v31, 16 }
  0x10   : > { %vm488_vm7 = vcmp.lt.s32.totalorder %v1547_v31, 16  ;;  %vm773_vm8 = vcmp.lt.s32.totalorder %v1547_v31, 127  ;;  %vm658_vm11 = vcmp.lt.s32.totalorder %v1547_v31, 1  ;;  %vm837_vm14 = vcmp.lt.s32.totalorder %v1547_v31, 113 }
  0x11   : > { %v366_v37 = vand.u32 15, %v1550_v32  ;;  %vm1555_vm3 = vcmp.lt.s32.totalorder %v365_v34, 15  ;;  %vm1608_vm13 = vcmp.gt.s32.totalorder %v365_v34, 0  ;;  %vm370_vm15 = vcmp.lt.s32.totalorder %v1550_v32, 240 }
  0x12   : > { %vm595_vm6 = vmand %vm367_vm4, %vm1555_vm3 }
  0x13   : > { %vm1560_vm5 = vcmp.lt.s32.totalorder %v366_v37, 15  ;;  %vm1596_vm12 = vcmp.gt.s32.totalorder %v366_v37, 0 }
  0x15   : > { %454 = vperm.xlu0 %1385, %v446_v3  }
  0x16   : > { %v377_v4 = vld.sshfl [vmem:[#allocation1] sm:$0xff pattern:$0x75316420]  ;;  %v378_v5 = vld.sshfl [vmem:[#allocation1 + $0x8] sm:$0xff pattern:$0x75316420] }
  0x17   : > { %v381_v6 = vpack.c.bf16 %v377_v4, %v377_v4  ;;  %v382_v7 = vpack.c.bf16 %v378_v5, %v378_v5  ;;  %1065 = vst [vmem:[#allocation1] ss:$2 sm:$0xff] %v1517_v2 }
  0x19   : > { %v396_v8 = vsel %vm394_vm0, %v381_v6, 0  ;;  %v399_v9 = vsel %vm394_vm0, %v382_v7, 0 }
  0x1a   : > { %408 = vmatpush.bf16.msra.mxu0 %v396_v8  ;;  %422 = vmatpush.bf16.msra.mxu1 %v399_v9 }
  0x1d   : > { %1280 = vmatmul.msk.bf16.vlgmr.msra.gmra.mxu0 %vm390_vm1, %v1358_v10  ;;  %1281 = vmatmul.msk.bf16.vlgmr.msra.gmra.mxu1 %vm390_vm1, %v1358_v10 }
  0x1e   : > { %v1067_v11 = vld.sshfl [vmem:[#allocation1 + $0x8] sm:$0xff pattern:$0x75316420]  ;;  %v1066_v12 = vld.sshfl [vmem:[#allocation1] sm:$0xff pattern:$0x75316420] }
  0x1f   : > { %1072 = vrot.lane.b32.xlu2 %v1067_v11, %s1437_s25  ;;  %1084 = vst [vmem:[#allocation1] ss:$2 sm:$0xff] %v1517_v2 }
  0x26   : > { %v1086_v13 = vld.sshfl [vmem:[#allocation1 + $0x8] sm:$0xff pattern:$0x75316420]  ;;  %v1085_v14 = vld.sshfl [vmem:[#allocation1] sm:$0xff pattern:$0x75316420] }
  0x27   : > { %1091 = vrot.lane.b32.xlu0 %v1086_v13, %s1438_s26  ;;  %1089 = vrot.lane.b32.xlu2 %v1085_v14, %s1438_s26 }
  0x79   : > { %v1073_v28 = vpop.permute.xlu2 %1072 }
  0x7f   : > { %v439_v15 = vpop.permute.xlu0 %438 }
  0x81   : > { %v1090_v29 = vpop.permute.xlu2 %1089 }
  0x87   : > { %v455_v22 = vpop.permute.xlu0 %454 }
  0x99   : > { %v1092_v40 = vpop.permute.xlu0 %1091 }
  0x9a   : > { %v1533_v16 = vpop.f32.mrf.mxu0  ;;  %v1535_v17 = vpop.f32.mrf.mxu1  ;;  %v1094_v54 = vsel %vm773_vm8, %v1092_v40, %v1090_v29  ;;  %v1093_v4 = vsel %vm773_vm8, %v1090_v29, %v1092_v40 }
  0x9b   : > { %v1096_v63 = vsel %vm1560_vm5, %v1094_v54, -inf }
  0xa2   : > { %v412_v18 = vpop.f32.mrf.mxu0  ;;  %v426_v19 = vpop.f32.mrf.mxu1 }
  0xa3   : > { %v443_v20 = vmul.f32 %v439_v15, %v412_v18  ;;  %v444_v21 = vmul.f32 %v439_v15, %v426_v19 }
  0xa5   : > { %v459_v23 = vadd.f32 %v455_v22, %v443_v20  ;;  %v460_v24 = vadd.f32 %v455_v22, %v444_v21  ;;  %v1095_v20 = vsel %vm1555_vm3, %v1093_v4, -inf }
  0xa7   : > { %v1537_v25 = vmax.f32 %v459_v23, 0.0  ;;  %v1539_v26 = vmax.f32 %v460_v24, 0.0 }
  0xa9   : > { %v1401_v27 = vpack.i.bf16 %v1539_v26, %v1537_v25  ;;  %v722_v58 = vpack.c.bf16 %v1539_v26, %v1539_v26  ;;  %v721_v62 = vpack.c.bf16 %v1537_v25, %v1537_v25 }
  0xab   : > { %1402 = vrot.lane.b32.xlu0 %v1401_v27, %s1437_s25  ;;  %1397 = vrot.lane.b32.xlu2 %v1401_v27, %s1439_s27  ;;  %v735_v11 = vsel %vm511_vm9, %v722_v58, 0  ;;  %v732_v15 = vsel %vm511_vm9, %v721_v62, 0 }
  0xac   : > { %1387 = vrot.lane.b32.xlu1 %v1401_v27, %s1440_s28 }
  0xb3   : > { %1417 = vrot.lane.b32.xlu0 %v1401_v27, %s1441_s29  ;;  %1412 = vrot.lane.b32.xlu2 %v1401_v27, %s1442_s30 }
  0xb4   : > { %1070 = vrot.lane.b32.xlu1 %v1066_v12, %s1437_s25  ;;  %v1099_v12 = vrot.slane %v1096_v63, 4 }
  0xb6   : > { %v1100_v26 = vsel %vm511_vm9, %v1095_v20, %v1099_v12 }
  0xbc   : > { %1392 = vrot.lane.b32.xlu1 %v1401_v27, %s1443_s11  ;;  %s1357_s11 = sshll.u32 %s1819_s14, 6 }
  0xbd   : > { %s1777_s16 = scalar_lea.vmem %s1809_s10, %s1357_s11 }
  0xc4   : > { %1407 = vrot.lane.b32.xlu1 %v1401_v27, %s1438_s26 }
  0xcc   : > { %1422 = vrot.lane.b32.xlu1 %v1401_v27, %s1444_s12 }
 0x105   : > { %v1398_v33 = vpop.permute.xlu2 %1397 }
 0x106   : > { %v1400_v35 = vunpack.i.h.bf16 %v1398_v33  ;;  %v1399_v36 = vunpack.i.l.bf16 %v1398_v33 }
 0x108   : > { %v593_v41 = vsel %vm592_vm2, %v1399_v36, %v1400_v35  ;;  %v594_v42 = vsel %vm592_vm2, %v1400_v35, %v1399_v36  ;;  %vm469_vm2 = vcmp.lt.s32.totalorder %v1547_v31, 17 }
 0x109   : > { %v602_v44 = vsel %vm1560_vm5, %v593_v41, 0.0  ;;  %v601_v47 = vsel %vm595_vm6, %v594_v42, 0.0  ;;  %vm841_vm6 = vmand %vm370_vm15, %vm1596_vm12 }
 0x10a   : > { %v607_v50 = vpack.c.bf16 %v602_v44, %v602_v44  ;;  %v606_v53 = vpack.c.bf16 %v601_v47, %v601_v47 }
 0x10c   : > { %v620_v61 = vsel %vm511_vm9, %v607_v50, 0  ;;  %v617_v1 = vsel %vm511_vm9, %v606_v53, 0  ;;  %v1361_v50 = vld [vmem:[%s1803_s4 + $0x10] sm:$0xff] }
 0x10d   : > { %v1413_v3 = vpop.permute.xlu2 %1412 }
 0x10e   : > { %v1415_v18 = vunpack.i.h.bf16 %v1413_v3  ;;  %v1414_v19 = vunpack.i.l.bf16 %v1413_v3 }
 0x110   : > { %v839_v27 = vsel %vm837_vm14, %v1415_v18, %v1414_v19  ;;  %v838_v35 = vsel %vm837_vm14, %v1414_v19, %v1415_v18 }
 0x111   : > { %v847_v40 = vsel %vm841_vm6, %v839_v27, 0.0  ;;  %v846_v47 = vsel %vm1608_vm13, %v838_v35, 0.0 }
 0x11d   : > { %v1403_v59 = vpop.permute.xlu0 %1402 }
 0x11e   : > { %v1388_v43 = vpop.permute.xlu1 %1387  ;;  %v1405_v8 = vunpack.i.h.bf16 %v1403_v59  ;;  %v1404_v9 = vunpack.i.l.bf16 %v1403_v59 }
 0x11f   : > { %v1390_v45 = vunpack.i.h.bf16 %v1388_v43  ;;  %v1389_v46 = vunpack.i.l.bf16 %v1388_v43 }
 0x120   : > { %v660_v24 = vsel %vm658_vm11, %v1405_v8, %v1404_v9  ;;  %v659_v25 = vsel %vm658_vm11, %v1404_v9, %v1405_v8 }
 0x121   : > { %v489_v48 = vsel %vm488_vm7, %v1389_v46, %v1390_v45  ;;  %v490_v49 = vsel %vm488_vm7, %v1390_v45, %v1389_v46  ;;  %v665_v33 = vsel %vm1608_vm13, %v660_v24, 0.0  ;;  %v666_v34 = vsel %vm1596_vm12, %v659_v25, 0.0  ;;  %v1186_v24 = vld [vmem:[%s1807_s8] sm:$0xff] }
 0x122   : > { %v501_v51 = vpack.c.bf16 %v489_v48, %v489_v48  ;;  %v495_v52 = vsel %vm367_vm4, %v490_v49, 0.0  ;;  %v670_v43 = vpack.c.bf16 %v665_v33, %v665_v33  ;;  %v671_v44 = vpack.c.bf16 %v666_v34, %v666_v34  ;;  %v1363_v25 = vld [vmem:[%s1803_s4 + $0x20] sm:$0xff] }
 0x123   : > { %v500_v55 = vpack.c.bf16 %v495_v52, %v495_v52  ;;  %v1359_v52 = vld [vmem:[%s1803_s4] sm:$0xff] }
 0x124   : > { %v516_v56 = vsel %vm511_vm9, %v501_v51, 0  ;;  %v852_v51 = vpack.c.bf16 %v847_v40, %v847_v40  ;;  %v681_v54 = vsel %vm511_vm9, %v670_v43, 0  ;;  %v1046_v40 = vld [vmem:[%s1805_s6 + $0x8] sm:$0xff] }
 0x125   : > { %539 = vmatpush.bf16.msra.mxu3 %v516_v56  ;;  %v513_v60 = vsel %vm511_vm9, %v500_v55, 0  ;;  %v684_v55 = vsel %vm511_vm9, %v671_v44, 0  ;;  %v1364_v43 = vld [vmem:[%s1803_s4 + $0x28] sm:$0xff]  ;;  %v1367_v44 = vld [vmem:[%s1803_s4 + $0x40] sm:$0xff] }
 0x126   : > { %v1071_v0 = vpop.permute.xlu1 %1070  ;;  %525 = vmatpush.bf16.msra.mxu2 %v513_v60  ;;  %v851_v60 = vpack.c.bf16 %v846_v47, %v846_v47  ;;  %v865_v63 = vsel %vm511_vm9, %v852_v51, 0  ;;  %v1045_v47 = vld [vmem:[%s1805_s6] sm:$0xff] }
 0x127   : > { %v1074_v6 = vsel %vm658_vm11, %v1071_v0, %v1073_v28  ;;  %v1075_v7 = vsel %vm658_vm11, %v1073_v28, %v1071_v0  ;;  %vm472_vm11 = vmand %vm367_vm4, %vm1608_vm13  ;;  %v1418_v0 = vpop.permute.xlu0 %1417 }
 0x128   : > { %v1077_v10 = vsel %vm1596_vm12, %v1074_v6, -inf  ;;  %1289 = vmatmul.msk.bf16.vlgmr.msra.gmra.mxu3 %vm507_vm10, %v1360_v57  ;;  %v1076_v21 = vsel %vm1608_vm13, %v1075_v7, -inf  ;;  %v862_v4 = vsel %vm511_vm9, %v851_v60, 0  ;;  %v1420_v7 = vunpack.i.h.bf16 %v1418_v0  ;;  %vm971_vm13 = vmand %vm370_vm15, %vm1560_vm5 }
 0x129   : > { %643 = vmatpush.bf16.msrb.mxu3 %v620_v61  ;;  %v1080_v14 = vrot.slane %v1077_v10, 4  ;;  %1288 = vmatmul.msk.bf16.vlgmr.msra.gmra.mxu2 %vm507_vm10, %v1360_v57  ;;  %v1419_v8 = vunpack.i.l.bf16 %v1418_v0 }
 0x12a   : > { %629 = vmatpush.bf16.msrb.mxu2 %v617_v1 }
 0x12b   : > { %v1081_v22 = vsel %vm511_vm9, %v1076_v21, %v1080_v14 }
 0x12c   : > { %v1083_v23 = vmax.f32 %v1517_v2, %v1081_v22 }
 0x12d   : > { %758 = vmatpush.bf16.msra.mxu3 %v735_v11  ;;  %v429_v11 = vld [vmem:[%s1801_s2] sm:$0xff] }
 0x12e   : > { %744 = vmatpush.bf16.msra.mxu2 %v732_v15  ;;  %v1629_v28 = vmax.f32 %v1083_v23, %v1100_v26  ;;  %v1393_v29 = vpop.permute.xlu1 %1392 }
 0x12f   : > { %v1395_v2 = vunpack.i.h.bf16 %v1393_v29  ;;  %v1394_v30 = vunpack.i.l.bf16 %v1393_v29  ;;  %v1029_v29 = vld [vmem:[%s1804_s5] sm:$0xff] }
 0x130   : > { %1104 = vst [vmem:[#allocation1] ss:$2 sm:$0xff] %v1629_v28 }
 0x131   : > { %v471_v36 = vsel %vm469_vm2, %v1395_v2, %v1394_v30  ;;  %v470_v37 = vsel %vm469_vm2, %v1394_v30, %v1395_v2  ;;  %v1362_v2 = vld [vmem:[%s1803_s4 + $0x18] sm:$0xff] }
 0x132   : > { %v478_v41 = vsel %vm472_vm11, %v471_v36, 0.0  ;;  %v479_v42 = vsel %vm1596_vm12, %v470_v37, 0.0  ;;  %vm967_vm12 = vcmp.lt.s32.totalorder %v1547_v31, 111 }
 0x133   : > { %v482_v45 = vpack.c.bf16 %v478_v41, %v478_v41  ;;  %v483_v46 = vpack.c.bf16 %v479_v42, %v479_v42  ;;  %v445_v41 = vld [vmem:[%s1802_s3] sm:$0xff]  ;;  %v1365_v42 = vld [vmem:[%s1803_s4 + $0x30] sm:$0xff] }
 0x135   : > { %v555_v48 = vsel %vm511_vm9, %v482_v45, 0  ;;  %v558_v49 = vsel %vm511_vm9, %v483_v46, 0  ;;  %v1366_v45 = vld [vmem:[%s1803_s4 + $0x38] sm:$0xff]  ;;  %v1030_v46 = vld [vmem:[%s1804_s5 + $0x8] sm:$0xff] }
 0x136   : > { %v1408_v53 = vpop.permute.xlu1 %1407  ;;  %567 = vmatpush.bf16.msrb.mxu0 %v555_v48  ;;  %581 = vmatpush.bf16.msrb.mxu1 %v558_v49  ;;  %v1194_v49 = vld [vmem:[%s1808_s9] sm:$0xff] }
 0x137   : > { %v1410_v56 = vunpack.i.h.bf16 %v1408_v53  ;;  %v1409_v57 = vunpack.i.l.bf16 %v1408_v53  ;;  %v1106_v58 = vld.sshfl [vmem:[#allocation1 + $0x8] sm:$0xff pattern:$0x75316420]  ;;  %v1105_v59 = vld.sshfl [vmem:[#allocation1] sm:$0xff pattern:$0x75316420] }
 0x138   : > { %1111 = vrot.lane.b32.xlu0 %v1106_v58, %s1440_s28  ;;  %1109 = vrot.lane.b32.xlu2 %v1105_v59, %s1440_s28  ;;  %1123 = vst [vmem:[#allocation1] ss:$2 sm:$0xff] %v1629_v28 }
 0x139   : > { %v774_v61 = vsel %vm773_vm8, %v1409_v57, %v1410_v56  ;;  %v775_v62 = vsel %vm773_vm8, %v1410_v56, %v1409_v57  ;;  %1303 = vmatmul.msk.bf16.vlgmr.msrb.gmra.mxu3 %vm507_vm10, %v1361_v50  ;;  %1294 = vmatmul.msk.bf16.vlgmr.msrb.gmra.mxu0 %vm507_vm10, %v1359_v52  ;;  %vm903_vm8 = vcmp.lt.s32.totalorder %v1547_v31, 112 }
 0x13a   : > { %693 = vmatpush.bf16.msra.mxu0 %v681_v54  ;;  %707 = vmatpush.bf16.msra.mxu1 %v684_v55  ;;  %v780_v1 = vsel %vm1555_vm3, %v774_v61, 0.0  ;;  %v781_v3 = vsel %vm1560_vm5, %v775_v62, 0.0  ;;  %v905_v19 = vsel %vm903_vm8, %v1420_v7, %v1419_v8  ;;  %v904_v23 = vsel %vm903_vm8, %v1419_v8, %v1420_v7 }
 0x13b   : > { %888 = vmatpush.bf16.msrb.mxu3 %v865_v63  ;;  %1295 = vmatmul.msk.bf16.vlgmr.msrb.gmra.mxu1 %vm507_vm10, %v1359_v52  ;;  %v785_v5 = vpack.c.bf16 %v780_v1, %v780_v1  ;;  %v786_v6 = vpack.c.bf16 %v781_v3, %v781_v3  ;;  %v911_v39 = vsel %vm370_vm15, %v905_v19, 0.0  ;;  %v915_v30 = vpack.c.bf16 %v904_v23, %v904_v23 }
 0x13c   : > { %1302 = vmatmul.msk.bf16.vlgmr.msrb.gmra.mxu2 %vm507_vm10, %v1361_v50  ;;  %v916_v33 = vpack.c.bf16 %v911_v39, %v911_v39 }
 0x13d   : > { %874 = vmatpush.bf16.msrb.mxu2 %v862_v4  ;;  %v796_v9 = vsel %vm511_vm9, %v785_v5, 0  ;;  %v799_v10 = vsel %vm511_vm9, %v786_v6, 0  ;;  %v926_v38 = vsel %vm511_vm9, %v915_v30, 0 }
 0x13e   : > { %v1423_v12 = vpop.permute.xlu1 %1422  ;;  %808 = vmatpush.bf16.msrb.mxu0 %v796_v9  ;;  %822 = vmatpush.bf16.msrb.mxu1 %v799_v10  ;;  %v929_v36 = vsel %vm511_vm9, %v916_v33, 0 }
 0x13f   : > { %v1425_v13 = vunpack.i.h.bf16 %v1423_v12  ;;  %v1424_v14 = vunpack.i.l.bf16 %v1423_v12  ;;  %v1125_v15 = vld.sshfl [vmem:[#allocation1 + $0x8] sm:$0xff pattern:$0x75316420]  ;;  %v1124_v18 = vld.sshfl [vmem:[#allocation1] sm:$0xff pattern:$0x75316420] }
 0x140   : > { %433 = vperm.xlu0 %1385, %v429_v11   ;;  %1130 = vrot.lane.b32.xlu2 %v1125_v15, %s1441_s29 }
 0x141   : > { %v969_v20 = vsel %vm967_vm12, %v1425_v13, %v1424_v14  ;;  %1128 = vrot.lane.b32.xlu1 %v1124_v18, %s1441_s29  ;;  %v968_v21 = vsel %vm967_vm12, %v1424_v14, %v1425_v13 }
 0x142   : > { %v977_v22 = vsel %vm971_vm13, %v969_v20, 0.0  ;;  %v976_v27 = vsel %vm1555_vm3, %v968_v21, 0.0 }
 0x143   : > { %v982_v26 = vpack.c.bf16 %v977_v22, %v977_v22  ;;  %v981_v34 = vpack.c.bf16 %v976_v27, %v976_v27 }
 0x145   : > { %v995_v35 = vsel %vm511_vm9, %v982_v26, 0  ;;  %v992_v37 = vsel %vm511_vm9, %v981_v34, 0 }
 0x148   : > { %1189 = vperm.xlu0 %1385, %v1186_v24   ;;  %1038 = vperm.xlu2 %1427, %v1030_v46  }
 0x149   : > { %1033 = vperm.xlu1 %1426, %v1029_v29   ;;  %1319 = vmatmul.msk.bf16.vlgmr.msra.gmra.mxu3 %vm507_vm10, %v1363_v25 }
 0x14a   : > { %1018 = vmatpush.bf16.msra.mxu3 %v995_v35  ;;  %1310 = vmatmul.msk.bf16.vlgmr.msra.gmra.mxu0 %vm507_vm10, %v1362_v2 }
 0x14b   : > { %1311 = vmatmul.msk.bf16.vlgmr.msra.gmra.mxu1 %vm507_vm10, %v1362_v2  ;;  %938 = vmatpush.bf16.msra.mxu0 %v926_v38 }
 0x14c   : > { %1318 = vmatmul.msk.bf16.vlgmr.msra.gmra.mxu2 %vm507_vm10, %v1363_v25  ;;  %952 = vmatpush.bf16.msra.mxu1 %v929_v36  ;;  %v1142_v25 = vld [vmem:[%s1806_s7] sm:$0xf] }
 0x14d   : > { %1004 = vmatpush.bf16.msra.mxu2 %v992_v37 }
 0x150   : > { %1054 = vperm.xlu0 %1385, %v1046_v40   ;;  %1049 = vperm.xlu2 %1427, %v1045_v47  }
 0x151   : > { %449 = vperm.xlu1 %1426, %v445_v41  }
 0x159   : > { %1335 = vmatmul.msk.bf16.vlgmr.msrb.gmra.mxu3 %vm507_vm10, %v1365_v42  ;;  %1197 = vperm.xlu1 %1426, %v1194_v49  }
 0x15a   : > { %1326 = vmatmul.msk.bf16.vlgmr.msrb.gmra.mxu0 %vm507_vm10, %v1364_v43 }
 0x15b   : > { %1327 = vmatmul.msk.bf16.vlgmr.msrb.gmra.mxu1 %vm507_vm10, %v1364_v43 }
 0x15c   : > { %1334 = vmatmul.msk.bf16.vlgmr.msrb.gmra.mxu2 %vm507_vm10, %v1365_v42 }
 0x169   : > { %1351 = vmatmul.msk.bf16.vlgmr.msra.gmra.mxu3 %vm507_vm10, %v1367_v44 }
 0x16a   : > { %1342 = vmatmul.msk.bf16.vlgmr.msra.gmra.mxu0 %vm507_vm10, %v1366_v45 }
 0x16b   : > { %1343 = vmatmul.msk.bf16.vlgmr.msra.gmra.mxu1 %vm507_vm10, %v1366_v45 }
 0x16c   : > { %1350 = vmatmul.msk.bf16.vlgmr.msra.gmra.mxu2 %vm507_vm10, %v1367_v44 }
 0x192   : > { %v1110_v48 = vpop.permute.xlu2 %1109 }
 0x19a   : > { %v1131_v57 = vpop.permute.xlu2 %1130 }
 0x1aa   : > { %v1112_v50 = vpop.permute.xlu0 %1111 }
 0x1ab   : > { %v541_v51 = vpop.f32.mrf.mxu3  ;;  %v1113_v53 = vsel %vm488_vm7, %v1110_v48, %v1112_v50  ;;  %v1114_v54 = vsel %vm488_vm7, %v1112_v50, %v1110_v48 }
 0x1ac   : > { %v527_v52 = vpop.f32.mrf.mxu2  ;;  %v1119_v55 = vrot.slane %v1113_v53, 4  ;;  %v1115_v56 = vsel %vm367_vm4, %v1114_v54, -inf }
 0x1ae   : > { %v1120_v60 = vsel %vm511_vm9, %v1115_v56, %v1119_v55 }
 0x1af   : > { %v1122_v3 = vmax.f32 %v1629_v28, %v1120_v60 }
 0x1b2   : > { %v434_v32 = vpop.permute.xlu0 %433 }
 0x1b3   : > { %v1129_v58 = vpop.permute.xlu1 %1128  ;;  %v543_v59 = vpop.f32.mrf.mxu3  ;;  %v441_v13 = vmul.f32 %v434_v32, %v1533_v16  ;;  %v442_v28 = vmul.f32 %v434_v32, %v1535_v17 }
 0x1b4   : > { %v1133_v61 = vsel %vm903_vm8, %v1131_v57, %v1129_v58  ;;  %v529_v62 = vpop.f32.mrf.mxu2  ;;  %v1132_v4 = vsel %vm903_vm8, %v1129_v58, %v1131_v57 }
 0x1b5   : > { %v1135_v63 = vsel %vm370_vm15, %v1133_v61, -inf }
 0x1b6   : > { %v1138_v0 = vrot.slane %v1135_v63, 4  ;;  %v569_v1 = vpop.f32.mrf.mxu0 }
 0x1b7   : > { %v570_v35 = vadd.f32 %v569_v1, %v527_v52 }
 0x1b8   : > { %v583_v5 = vpop.f32.mrf.mxu1  ;;  %v1139_v6 = vsel %vm511_vm9, %v1132_v4, %v1138_v0 }
 0x1b9   : > { %v1141_v7 = vmax.f32 %v1122_v3, %v1139_v6  ;;  %v584_v34 = vadd.f32 %v583_v5, %v541_v51  ;;  %v1039_v6 = vpop.permute.xlu2 %1038 }
 0x1bb   : > { %1144 = vst [vmem:[#allocation1] ss:$2 sm:$0xff] %v1141_v7  ;;  %v1769_v8 = vpop.permute.xlu1 %1033 }
 0x1bc   : > { %v645_v9 = vpop.f32.mrf.mxu3 }
 0x1bd   : > { %v651_v36 = vadd.f32 %v645_v9, %v584_v34 }
 0x1be   : > { %v571_v11 = vpop.f32.mrf.mxu0 }
 0x1bf   : > { %v631_v10 = vpop.f32.mrf.mxu2  ;;  %v572_v45 = vadd.f32 %v571_v11, %v529_v62 }
 0x1c0   : > { %v585_v12 = vpop.f32.mrf.mxu1  ;;  %v650_v40 = vadd.f32 %v631_v10, %v570_v35 }
 0x1c1   : > { %v586_v43 = vadd.f32 %v585_v12, %v543_v59  ;;  %v1190_v12 = vpop.permute.xlu0 %1189 }
 0x1c2   : > { %v1145_v14 = vld.sshfl [vmem:[#allocation1] sm:$0xff pattern:$0x75316420]  ;;  %v1146_v31 = vld.sshfl [vmem:[#allocation1 + $0x8] sm:$0xff pattern:$0x75316420] }
 0x1c3   : > { %v450_v15 = vpop.permute.xlu1 %449  ;;  %v1149_v18 = vpack.c.bf16 %v1145_v14, %v1145_v14  ;;  %v1150_v19 = vpack.c.bf16 %v1146_v31, %v1146_v31 }
 0x1c4   : > { %v457_v20 = vadd.f32 %v450_v15, %v441_v13  ;;  %v458_v21 = vadd.f32 %v450_v15, %v442_v28  ;;  %v647_v22 = vpop.f32.mrf.mxu3 }
 0x1c5   : > { %v1155_v23 = vsel %vm394_vm0, %v1149_v18, 0  ;;  %v1158_v16 = vsel %vm394_vm0, %v1150_v19, 0  ;;  %v653_v48 = vadd.f32 %v647_v22, %v586_v43 }
 0x1c6   : > { %v461_v17 = vmax.f32 %v457_v20, 0.0  ;;  %v462_v39 = vmax.f32 %v458_v21, 0.0  ;;  %1167 = vmatpush.bf16.msrb.mxu0 %v1155_v23  ;;  %1180 = vmatpush.bf16.msrb.mxu1 %v1158_v16  ;;  %v1050_v21 = vpop.permute.xlu2 %1049 }
 0x1c7   : > { %v633_v24 = vpop.f32.mrf.mxu2  ;;  %v695_v26 = vpop.f32.mrf.mxu0 }
 0x1c8   : > { %1204 = vst [vmem:[%s1777_s16] sm:$0xff] %v461_v17  ;;  %v709_v27 = vpop.f32.mrf.mxu1  ;;  %v714_v46 = vadd.f32 %v695_v26, %v650_v40  ;;  %v652_v53 = vadd.f32 %v633_v24, %v572_v45 }
 0x1c9   : > { %1205 = vst [vmem:[%s1777_s16 + $0x8] sm:$0xff] %v462_v39  ;;  %1352 = vmatmul.msk.bf16.vlgmr.msrb.gmra.mxu0 %vm390_vm1, %v1142_v25  ;;  %1353 = vmatmul.msk.bf16.vlgmr.msrb.gmra.mxu1 %vm390_vm1, %v1142_v25  ;;  %v715_v44 = vadd.f32 %v709_v27, %v651_v36 }
 0x1cc   : > { %v760_v29 = vpop.f32.mrf.mxu3 }
 0x1cd   : > { %v766_v49 = vadd.f32 %v760_v29, %v715_v44 }
 0x1cf   : > { %v746_v2 = vpop.f32.mrf.mxu2  ;;  %v697_v30 = vpop.f32.mrf.mxu0 }
 0x1d0   : > { %v711_v33 = vpop.f32.mrf.mxu1  ;;  %v765_v54 = vadd.f32 %v746_v2, %v714_v46  ;;  %v716_v57 = vadd.f32 %v697_v30, %v652_v53  ;;  %v1055_v2 = vpop.permute.xlu0 %1054 }
 0x1d1   : > { %v717_v51 = vadd.f32 %v711_v33, %v653_v48 }
 0x1d4   : > { %v762_v38 = vpop.f32.mrf.mxu3 }
 0x1d5   : > { %v768_v61 = vadd.f32 %v762_v38, %v717_v51 }
 0x1d7   : > { %v748_v37 = vpop.f32.mrf.mxu2  ;;  %v810_v41 = vpop.f32.mrf.mxu0 }
 0x1d8   : > { %v824_v42 = vpop.f32.mrf.mxu1  ;;  %v829_v58 = vadd.f32 %v810_v41, %v765_v54  ;;  %v767_v59 = vadd.f32 %v748_v37, %v716_v57  ;;  %v1198_v41 = vpop.permute.xlu1 %1197 }
 0x1d9   : > { %v830_v52 = vadd.f32 %v824_v42, %v766_v49 }
 0x1dc   : > { %v890_v47 = vpop.f32.mrf.mxu3 }
 0x1dd   : > { %v896_v63 = vadd.f32 %v890_v47, %v830_v52 }
 0x1df   : > { %v876_v50 = vpop.f32.mrf.mxu2  ;;  %v812_v55 = vpop.f32.mrf.mxu0 }
 0x1e0   : > { %v826_v56 = vpop.f32.mrf.mxu1  ;;  %v895_v1 = vadd.f32 %v876_v50, %v829_v58  ;;  %v831_v7 = vadd.f32 %v812_v55, %v767_v59 }
 0x1e1   : > { %v832_v4 = vadd.f32 %v826_v56, %v768_v61 }
 0x1e4   : > { %v892_v60 = vpop.f32.mrf.mxu3 }
 0x1e5   : > { %v898_v11 = vadd.f32 %v892_v60, %v832_v4 }
 0x1e7   : > { %v878_v0 = vpop.f32.mrf.mxu2  ;;  %v940_v62 = vpop.f32.mrf.mxu0 }
 0x1e8   : > { %v954_v3 = vpop.f32.mrf.mxu1  ;;  %v959_v9 = vadd.f32 %v940_v62, %v895_v1  ;;  %v897_v28 = vadd.f32 %v878_v0, %v831_v7 }
 0x1e9   : > { %v960_v5 = vadd.f32 %v954_v3, %v896_v63 }
 0x1ec   : > { %v1020_v10 = vpop.f32.mrf.mxu3 }
 0x1ed   : > { %v1026_v32 = vadd.f32 %v1020_v10, %v960_v5 }
 0x1ef   : > { %v1006_v13 = vpop.f32.mrf.mxu2  ;;  %v1042_v31 = vmul.f32 %v1769_v8, %v1026_v32  ;;  %v942_v18 = vpop.f32.mrf.mxu0 }
 0x1f0   : > { %v1025_v14 = vadd.f32 %v1006_v13, %v959_v9  ;;  %v956_v15 = vpop.f32.mrf.mxu1  ;;  %v961_v22 = vadd.f32 %v942_v18, %v897_v28 }
 0x1f1   : > { %v962_v19 = vadd.f32 %v956_v15, %v898_v11  ;;  %v1058_v16 = vadd.f32 %v1050_v21, %v1042_v31 }
 0x1f2   : > { %v1041_v20 = vmul.f32 %v1769_v8, %v1025_v14 }
 0x1f3   : > { %v1062_v25 = vmax.f32 %v1058_v16, 0.0 }
 0x1f4   : > { %v1057_v23 = vadd.f32 %v1050_v21, %v1041_v20  ;;  %v1022_v17 = vpop.f32.mrf.mxu3 }
 0x1f5   : > { %v1028_v39 = vadd.f32 %v1022_v17, %v962_v19  ;;  %1207 = vst [vmem:[%s1777_s16 + $0x18] sm:$0xff] %v1062_v25 }
 0x1f6   : > { %v1061_v24 = vmax.f32 %v1057_v23, 0.0 }
 0x1f7   : > { %v1008_v26 = vpop.f32.mrf.mxu2  ;;  %v1044_v29 = vmul.f32 %v1039_v6, %v1028_v39 }
 0x1f8   : > { %v1027_v27 = vadd.f32 %v1008_v26, %v961_v22  ;;  %1206 = vst [vmem:[%s1777_s16 + $0x10] sm:$0xff] %v1061_v24 }
 0x1f9   : > { %v1060_v33 = vadd.f32 %v1055_v2, %v1044_v29 }
 0x1fa   : > { %v1043_v30 = vmul.f32 %v1039_v6, %v1027_v27 }
 0x1fb   : > { %v1064_v34 = vmax.f32 %v1060_v33, 0.0 }
 0x1fc   : > { %v1059_v8 = vadd.f32 %v1055_v2, %v1043_v30 }
 0x1fd   : > { %1209 = vst [vmem:[%s1777_s16 + $0x28] sm:$0xff] %v1064_v34 }
 0x1fe   : > { %v1063_v35 = vmax.f32 %v1059_v8, 0.0 }
 0x200   : > { %1208 = vst [vmem:[%s1777_s16 + $0x20] sm:$0xff] %v1063_v35 }
 0x246   : > { %v1169_v38 = vpop.f32.mrf.mxu0  ;;  %v1182_v36 = vpop.f32.mrf.mxu1 }
 0x247   : > { %v1192_v37 = vmul.f32 %v1190_v12, %v1169_v38  ;;  %v1193_v40 = vmul.f32 %v1190_v12, %v1182_v36 }
 0x249   : > { %v1200_v42 = vadd.f32 %v1198_v41, %v1192_v37  ;;  %v1201_v43 = vadd.f32 %v1198_v41, %v1193_v40 }
 0x24b   : > { %v1202_v44 = vmax.f32 %v1200_v42, 0.0  ;;  %v1203_v45 = vmax.f32 %v1201_v43, 0.0 }
 0x24d   : > { %1210 = vst [vmem:[%s1777_s16 + $0x30] sm:$0xff] %v1202_v44 }
 0x24e   : > { %1211 = vst [vmem:[%s1777_s16 + $0x38] sm:$0xff] %v1203_v45  ;;  %v1171_v46 = vpop.f32.mrf.mxu0  ;;  %v1184_v47 = vpop.f32.mrf.mxu1 }
 0x24f PF: > { %s20_s13 = sadd.s32 1, %s1434_s13  }
 0x250   : > { %p17_p4 = scmp.ge.s32.totalorder %s20_s13, 4  }
 0x252   :  { %19 = sbr.rel (!%p17_p4) target bundleno = 1 (0x1), region = 98 }

</bundles_post_ra>
